<compile_context>
chip_gen: v7x
topology: tpu7x:2x2x1
jax: 0.10.0
libtpu: 0.0.40
codegen_flags: <defaults>
</compile_context>

<pallas_src>
import numpy as np
import jax
import jax.numpy as jnp
from jax import lax
from jax.experimental import pallas as pl
from jax.experimental.pallas import tpu as pltpu

P_DROP = 0.5
# keep iff hash(idx, seed) < KEEP_THRESHOLD  (uniform over uint32 range)
_KEEP_THRESHOLD = np.uint32(min(2**32 - 1, int(round((1.0 - P_DROP) * float(2**32)))))
_SCALE = float(1.0 / (1.0 - P_DROP))


def dropout_flatten_kernel(seed_ref, x_ref, o_ref):
    shape = x_ref.shape  # dense tile, e.g. (16, 128)

    # Per-element linear index (int32 iota is always safe on Mosaic, then widen).
    rows = lax.broadcasted_iota(jnp.int32, shape, 0)
    cols = lax.broadcasted_iota(jnp.int32, shape, 1)
    idx = (rows * shape[1] + cols).astype(jnp.uint32)

    seed_u = seed_ref[0].astype(jnp.uint32)

    # murmur3-style finalizer over (idx, seed): cheap, good avalanche, VPU-only.
    z = idx * jnp.uint32(0x9E3779B9) + seed_u * jnp.uint32(0x85EBCA6B) + jnp.uint32(1)
    z = z ^ (z >> 16)
    z = z * jnp.uint32(0x7FEB352D)
    z = z ^ (z >> 15)
    z = z * jnp.uint32(0x846CA68B)
    z = z ^ (z >> 16)

    keep = z < jnp.uint32(_KEEP_THRESHOLD)
    x = x_ref[...]
    scale = jnp.asarray(_SCALE, dtype=x.dtype)
    o_ref[...] = jnp.where(keep, x * scale, jnp.zeros_like(x)).astype(o_ref.dtype)


def dropout_flatten(x_nchw, seed, training=True):
    """x_nchw: [N, C, H, W] (H == W == 1 in this module). Returns [N, C*H*W]."""
    n, c, h, w = x_nchw.shape
    per_row = c * h * w
    flat = n * per_row

    if not training:
        # Eval-mode dropout is the identity; flatten is free.
        return x_nchw.reshape(n, per_row)

    # Present a vreg-dense tile to the kernel: (flat//128, 128) packs 2048 f32
    # elements into 2 full vregs (vs 16 sublane-sparse vregs for (1, 2048)).
    if flat % 128 == 0:
        rows, cols = flat // 128, 128
    else:
        rows, cols = n, per_row  # fallback: whole-array block
    x2d = x_nchw.reshape(rows, cols)  # reshape is glue, no compute

    seed_arr = jnp.asarray([seed], dtype=jnp.int32)

    itemsize = np.dtype(x_nchw.dtype).itemsize
    cost = pl.CostEstimate(
        flops=2 * flat,                       # select + scale per element
        transcendentals=0,
        bytes_accessed=2 * flat * itemsize + 4,
    )

    out = pl.pallas_call(
        dropout_flatten_kernel,
        out_shape=jax.ShapeDtypeStruct((rows, cols), x2d.dtype),
        in_specs=[
            pl.BlockSpec(memory_space=pltpu.SMEM),                              # seed
            pl.BlockSpec((rows, cols), lambda: (0, 0), memory_space=pltpu.VMEM),
        ],
        out_specs=pl.BlockSpec((rows, cols), lambda: (0, 0), memory_space=pltpu.VMEM),
        input_output_aliases={1: 0},   # reuse x2d's buffer for the output
        cost_estimate=cost,
    )(seed_arr, x2d)

    # TODO(synk): for real models, fuse this mask+scale into the producer
    # (pool epilogue) or consumer (FC matmul) kernel instead of a standalone
    # 8 KiB pallas_call — launch overhead dominates at this size.
    return out.reshape(n, per_row)


if __name__ == "__main__":
    key = jax.random.PRNGKey(0)
    # Shape implied by the module: [1, 2048, 1, 1]
    x324 = jax.random.normal(key, (1, 2048, 1, 1), dtype=jnp.float32)

    y = dropout_flatten(x324, seed=1234, training=True)
    y = jax.block_until_ready(y)

    assert y.shape == (1, 2048), y.shape

    # Sanity: every output element is either 0 or (1/(1-p)) * input = 2 * input.
    x_flat = x324.reshape(1, 2048)
    zero = jnp.isclose(y, 0.0, atol=1e-6)
    scaled = jnp.isclose(y, 2.0 * x_flat, rtol=1e-5, atol=1e-6)
    assert bool(jnp.all(zero | scaled))

    # Loose distribution sanity check: roughly half the elements are kept.
    keep_frac = float(jnp.mean((~zero).astype(jnp.float32)))
    assert 0.30 < keep_frac < 0.70, keep_frac

    print("KERNEL_OK")
</pallas_src>

<mosaic_0001>
module attributes {stable_mosaic.version = 11 : i64} {
  func.func @dropout_flatten_kernel(%arg0: memref<1xi32, #tpu.memory_space<smem>>, %arg1: memref<16x128xf32, #tpu.memory_space<vmem>>, %arg2: memref<16x128xf32, #tpu.memory_space<vmem>>) attributes {dimension_semantics = [], scalar_prefetch = 0 : i64, scratch_operands = 0 : i64, tpu.core_type = #tpu.core_type<tc>} {
    %0 = tpu.iota {dimensions = array<i32: 0>} : vector<16x128xi32>
    %1 = tpu.iota {dimensions = array<i32: 1>} : vector<16x128xi32>
    %c128_i32 = arith.constant 128 : i32
    %2 = vector.broadcast %c128_i32 : i32 to vector<16x128xi32>
    %3 = arith.muli %0, %2 : vector<16x128xi32>
    %4 = arith.addi %3, %1 : vector<16x128xi32>
    %c0 = arith.constant 0 : index
    %5 = memref.load %arg0[%c0] : memref<1xi32, #tpu.memory_space<smem>>
    %c-1640531527_i32 = arith.constant -1640531527 : i32
    %6 = vector.broadcast %c-1640531527_i32 : i32 to vector<16x128xi32>
    %7 = arith.muli %4, %6 : vector<16x128xi32>
    %c-2048144789_i32 = arith.constant -2048144789 : i32
    %8 = arith.muli %5, %c-2048144789_i32 : i32
    %9 = vector.broadcast %8 : i32 to vector<16x128xi32>
    %10 = arith.addi %7, %9 : vector<16x128xi32>
    %c1_i32 = arith.constant 1 : i32
    %11 = vector.broadcast %c1_i32 : i32 to vector<16x128xi32>
    %12 = arith.addi %10, %11 : vector<16x128xi32>
    %c16_i32 = arith.constant 16 : i32
    %13 = vector.broadcast %c16_i32 : i32 to vector<16x128xi32>
    %14 = arith.shrui %12, %13 : vector<16x128xi32>
    %15 = arith.xori %12, %14 : vector<16x128xi32>
    %c2146121005_i32 = arith.constant 2146121005 : i32
    %16 = vector.broadcast %c2146121005_i32 : i32 to vector<16x128xi32>
    %17 = arith.muli %15, %16 : vector<16x128xi32>
    %c15_i32 = arith.constant 15 : i32
    %18 = vector.broadcast %c15_i32 : i32 to vector<16x128xi32>
    %19 = arith.shrui %17, %18 : vector<16x128xi32>
    %20 = arith.xori %17, %19 : vector<16x128xi32>
    %c-2073254261_i32 = arith.constant -2073254261 : i32
    %21 = vector.broadcast %c-2073254261_i32 : i32 to vector<16x128xi32>
    %22 = arith.muli %20, %21 : vector<16x128xi32>
    %c16_i32_0 = arith.constant 16 : i32
    %23 = vector.broadcast %c16_i32_0 : i32 to vector<16x128xi32>
    %24 = arith.shrui %22, %23 : vector<16x128xi32>
    %25 = arith.xori %22, %24 : vector<16x128xi32>
    %c-2147483648_i32 = arith.constant -2147483648 : i32
    %26 = vector.broadcast %c-2147483648_i32 : i32 to vector<16x128xi32>
    %27 = arith.cmpi ult, %25, %26 : vector<16x128xi32>
    %c0_1 = arith.constant 0 : index
    %c0_2 = arith.constant 0 : index
    %28 = vector.load %arg1[%c0_1, %c0_2] : memref<16x128xf32, #tpu.memory_space<vmem>>, vector<16x128xf32>
    %cst = arith.constant 2.000000e+00 : f32
    %29 = vector.broadcast %cst : f32 to vector<16x128xf32>
    %30 = arith.mulf %28, %29 : vector<16x128xf32>
    %cst_3 = arith.constant 0.000000e+00 : f32
    %31 = vector.broadcast %cst_3 : f32 to vector<16x128xf32>
    %32 = arith.select %27, %30, %31 : vector<16x128xi1>, vector<16x128xf32>
    %c0_4 = arith.constant 0 : index
    %c0_5 = arith.constant 0 : index
    %33 = vector.load %arg2[%c0_4, %c0_5] : memref<16x128xf32, #tpu.memory_space<vmem>>, vector<16x128xf32>
    tpu.vector_store %arg2[%c0_4, %c0_5], %32 {strides = array<i32>} : memref<16x128xf32, #tpu.memory_space<vmem>>, vector<16x128xf32>,
    return
  }
}

</mosaic_0001>

<bundles_post_ra>
// kernel: tpu_custom_call.1
= control target key start
LH: loop header
LB: loop body
LE: loop exit
PB: predicated region body
PF: predicated region fallthrough
CT: control target
= control target key end

     0   :  { %8 = vsyncpa [#allocation4], 0  ;;  %s192_s0 = inlined_call_operand.<no memory space> [shape: s32[1], index: 0, kind: input, shape index: {}]   ;;  %s193_s1 = inlined_call_operand.hbm [shape: f32[16,128], index: 1, kind: input, shape index: {}, may-alias: {1,2}]   ;;  %s194_s2 = inlined_call_operand.hbm [shape: f32[16,128], index: 2, kind: output, shape index: {}, may-alias: {1,2}]  }
   0x1   :  { %9 = vsyncpa [#allocation5], 0  ;;  %s140_s9 = smov [#allocation3]   ;;  %s92_s13 = scalar_lea.hbm %s193_s1, 256 }
   0x2   :  { %s17_s10 = sshll.u32 %s140_s9, 4  ;;  %p93_p0 = scmp.ne.s32.totalorder %s193_s1, %s92_s13  ;;  %s18_s10 = int_to_ptr.vmem [resolvable:$true] %s17_s10 }
   0x3   :  { %p96_p1 = scmp.lt.u32.totalorder %s92_s13, %s193_s1 }
   0x5   :  { %p98_p2 = pnand %p96_p1, %p93_p0 }
   0x7   :  { %101 = shalt.err (!%p98_p2)
}
   0x8   :  { %s102_s18 = scalar_lea.vmem %s18_s10, 256  ;;  %p107_p4 = scmp.lt.s32.totalorder %s18_s10, %s18_s10 }
   0x9   :  { %p103_p3 = scmp.ne.s32.totalorder %s18_s10, %s102_s18  ;;  %p108_p5 = scmp.lt.s32.totalorder %s102_s18, %s102_s18 }
   0xb   :  { %p109_p6 = por %p108_p5, %p107_p4 }
   0xd   :  { %p110_p7 = pnand %p109_p6, %p103_p3 }
   0xf   :  { %113 = shalt.err (!%p110_p7)
}
  0x10   :  { %s141_s19 = smov 128   ;;  %s142_s20 = smov 8  }
  0x11   :  { %23 = dma.hbm_to_vmem [thread:$0]  %s193_s1, 256, %s18_s10, [#allocation4], %s141_s19, %s141_s19, %s142_s20  }
  0x12   :  { %136 = dma.done.wait [#allocation4], 256  }
  0x13   :  { %137 = vsyncadd [#allocation4], 4294967040  ;;  %v27_v0 = vlaneseq  ;;  %s39_s25 = smul.u32 2246822507, %s192_s0  ;;  %v63_v25 = vld [vmem:[#allocation3] sm:$0xff]  ;;  %v64_v29 = vld [vmem:[#allocation3 + $0x8] sm:$0xff] }
  0x14   :  { %v65_v30 = vmul.f32 2.0, %v63_v25  ;;  %v66_v33 = vmul.f32 2.0, %v64_v29  ;;  %s143_s0 = smov [#allocation6]  }
  0x15   :  { %v28_v1 = vshrl.u32 %v27_v0, 7  ;;  %v31_v2 = vand.u32 127, %v27_v0  ;;  %v40_v7 = vstv %s39_s25  ;;  %s76_s1 = sshll.u32 %s143_s0, 4  ;;  %s77_s1 = int_to_ptr.vmem [resolvable:$true] %s76_s1 }
  0x16   :  { %s114_s26 = scalar_lea.vmem %s77_s1, 256  ;;  %p119_p9 = scmp.lt.s32.totalorder %s77_s1, %s77_s1 }
  0x17   :  { %v32_v3 = vmul.u32 128, %v28_v1  ;;  %v29_v4 = vadd.s32 8, %v28_v1  ;;  %p115_p8 = scmp.ne.s32.totalorder %s77_s1, %s114_s26  ;;  %p120_p10 = scmp.lt.s32.totalorder %s114_s26, %s114_s26 }
  0x19   :  { %v34_v5 = vadd.s32 %v32_v3, %v31_v2  ;;  %v33_v6 = vmul.u32 128, %v29_v4  ;;  %p121_p11 = por %p120_p10, %p119_p9 }
  0x1b   :  { %v37_v8 = vmul.u32 2654435769, %v34_v5  ;;  %v35_v9 = vadd.s32 %v33_v6, %v31_v2  ;;  %p122_p12 = pnand %p121_p11, %p115_p8 }
  0x1d   :  { %v41_v10 = vadd.s32 %v40_v7, %v37_v8  ;;  %v38_v11 = vmul.u32 2654435769, %v35_v9 }
  0x1f   :  { %v43_v12 = vadd.s32 1, %v41_v10  ;;  %v42_v13 = vadd.s32 %v40_v7, %v38_v11 }
  0x21   :  { %v45_v14 = vshrl.u32 %v43_v12, 16  ;;  %v44_v15 = vadd.s32 1, %v42_v13 }
  0x23   :  { %v47_v16 = vxor.u32 %v45_v14, %v43_v12  ;;  %v46_v17 = vshrl.u32 %v44_v15, 16 }
  0x25   :  { %v49_v18 = vmul.u32 2146121005, %v47_v16  ;;  %v48_v19 = vxor.u32 %v46_v17, %v44_v15 }
  0x27   :  { %v51_v20 = vshrl.u32 %v49_v18, 15  ;;  %v50_v21 = vmul.u32 2146121005, %v48_v19 }
  0x29   :  { %v53_v22 = vxor.u32 %v51_v20, %v49_v18  ;;  %v52_v23 = vshrl.u32 %v50_v21, 15 }
  0x2b   :  { %v55_v24 = vmul.u32 2221713035, %v53_v22  ;;  %v54_v26 = vxor.u32 %v52_v23, %v50_v21 }
  0x2d   :  { %v57_v27 = vshrl.u32 %v55_v24, 16  ;;  %v56_v28 = vmul.u32 2221713035, %v54_v26 }
  0x2f   :  { %v59_v31 = vxor.u32 %v57_v27, %v55_v24  ;;  %v58_v32 = vshrl.u32 %v56_v28, 16 }
  0x31   :  { %vm61_vm0 = vcmp.lt.u32.totalorder %v59_v31, 2147483648  ;;  %v60_v34 = vxor.u32 %v58_v32, %v56_v28 }
  0x32   :  { %v67_v35 = vsel %vm61_vm0, %v65_v30, 0.0 }
  0x33   :  { %69 = vst [vmem:[#allocation6] sm:$0xff] %v67_v35  ;;  %vm62_vm1 = vcmp.lt.u32.totalorder %v60_v34, 2147483648 }
  0x34   :  { %v68_v36 = vsel %vm62_vm1, %v66_v33, 0.0 }
  0x35   :  { %70 = vst [vmem:[#allocation6 + $0x8] sm:$0xff] %v68_v36 }
  0x36   :  { %125 = shalt.err (!%p122_p12)
}
  0x37   :  { %s126_s29 = scalar_lea.hbm %s194_s2, 256 }
  0x38   :  { %p127_p13 = scmp.ne.s32.totalorder %s194_s2, %s126_s29  ;;  %p130_p0 = scmp.lt.u32.totalorder %s126_s29, %s194_s2 }
  0x3a   :  { %p132_p1 = pnand %p130_p0, %p127_p13 }
  0x3c   :  { %135 = shalt.err (!%p132_p1)
}
  0x3d   :  { %82 = dma.vmem_to_hbm [thread:$0]  %s77_s1, 256, %s194_s2, [#allocation5], %s141_s19, %s141_s19, %s142_s20  }
  0x3e   :  { %138 = dma.done.wait [#allocation5], 256  }
  0x3f   :  { %139 = vsyncadd [#allocation5], 4294967040 }
  0x40   :  { %86 = vsyncpa [#allocation4], 1 }
  0x41   :  { %87 = vsyncpa [#allocation5], 1 }

</bundles_post_ra>
